<compile_context>
chip_gen: v7x
topology: tpu7x:2x2x1
jax: 0.10.0
libtpu: 0.0.40
codegen_flags: <defaults>
</compile_context>

<pallas_src>
import math
from functools import partial

import jax
import jax.numpy as jnp
from jax.experimental import pallas as pl
from jax.experimental.pallas import tpu as pltpu


def _pooled_size(n, k, s, p, ceil_mode):
    if ceil_mode:
        return math.ceil((n + 2 * p - (k - 1) - 1) / s) + 1
    return (n + 2 * p - (k - 1) - 1) // s + 1


def _right_pad(n, out_n, k, s, p):
    return max(0, (out_n - 1) * s + k - (n + 2 * p))


def _chip_info():
    """Returns (physical VMEM bytes per TensorCore, has_two_tensorcores)."""
    kind = ""
    try:
        kind = jax.devices()[0].device_kind.lower()
    except Exception:
        pass
    is_v7 = "7" in kind                     # e.g. "tpu7x"; conservative default
    vmem_cap = (64 if is_v7 else 128) * 1024 * 1024
    return vmem_cap, is_v7


def pooled_shape(x_shape, *, kernel_size=2, stride=2, padding=0, ceil_mode=False):
    B, C, d2, d3 = x_shape
    n2 = _pooled_size(d2, kernel_size, stride, padding, ceil_mode)
    n3 = _pooled_size(d3, kernel_size, stride, padding, ceil_mode)
    return B, C, n2, n3


def init_sumspike(x_shape, *, kernel_size=2, stride=2, padding=0,
                  ceil_mode=False, dtype=jnp.float32):
    """Zero state in the kernel-native lane-dense layout (k*k, B*C, oh*ow)."""
    B, C, n2, n3 = pooled_shape(x_shape, kernel_size=kernel_size, stride=stride,
                                padding=padding, ceil_mode=ceil_mode)
    return jnp.zeros((kernel_size * kernel_size, B * C, n2 * n3), dtype)


def sumspike_to_natural(ss, B, C, n2, n3):
    """(k*k, B*C, n2*n3) kernel layout -> (B, C, k*k, n2, n3) module layout."""
    kk = ss.shape[0]
    return ss.reshape(kk, B, C, n2, n3).transpose(1, 2, 0, 3, 4)


def _li_pool_kernel(xu_ref, ss_ref, out_ref, nss_ref, *, kk):
    """One BC-tile of LIPooling, fully lane-dense.

    xu_ref:  (kk, tile_bc, L)  unfolded input patches
    ss_ref:  (kk, tile_bc, L)  running sumspike state (input)
    out_ref: (tile_bc, L)      pooled output
    nss_ref: (kk, tile_bc, L)  updated state (HBM-aliased with ss input)
    """
    # Pass 1: a_idx = ss_idx + x_idx, stored straight into the state output;
    # only the running max and the current tap are live (no kk temporaries).
    m = ss_ref[0] + xu_ref[0]
    nss_ref[0] = m
    for idx in range(1, kk):
        a = ss_ref[idx] + xu_ref[idx]
        nss_ref[idx] = a
        m = jnp.maximum(m, a)
    out_ref[...] = m
    # Pass 2: lateral inhibition — subtract the winner from every tap.
    # Dense in-VMEM re-read; nothing strided is recomputed.
    for idx in range(kk):
        nss_ref[idx] = nss_ref[idx] - m


@partial(jax.jit,
         static_argnames=("kernel_size", "stride", "padding", "ceil_mode"),
         donate_argnums=(1,))
def li_pooling(x, sumspike, *, kernel_size=2, stride=2, padding=0,
               ceil_mode=False):
    """One LIPooling forward step.

    x:        (B, C, D2, D3) float32
    sumspike: (k*k, B*C, oh*ow) running state from init_sumspike(); donated.
    returns (out, new_sumspike) with out: (B, C, oh, ow).
    """
    B, C, d2, d3 = x.shape
    k, s, p = kernel_size, stride, padding
    kk = k * k

    # Per-axis output sizes and (right-side) padding so every patch fits.
    n2 = _pooled_size(d2, k, s, p, ceil_mode)
    n3 = _pooled_size(d3, k, s, p, ceil_mode)
    pad2 = _right_pad(d2, n2, k, s, p)
    pad3 = _right_pad(d3, n3, k, s, p)
    if p > 0 or pad2 > 0 or pad3 > 0:
        # Matches the module: unfold zero-pads by p; ceil_mode adds right pad.
        x = jnp.pad(x, ((0, 0), (0, 0), (p, p + pad2), (p, p + pad3)))
    Hp, Wp = x.shape[2], x.shape[3]

    BC = B * C
    L = n2 * n3
    if sumspike.shape != (kk, BC, L):
        raise ValueError(f"sumspike shape {sumspike.shape} != {(kk, BC, L)}; "
                         "create it with init_sumspike(x.shape, ...)")
    if sumspike.dtype != x.dtype:
        # An implicit astype would copy and break the in-place alias/donation.
        raise ValueError(f"sumspike dtype {sumspike.dtype} != x dtype {x.dtype}")

    # ---- wrapper-side unfold into the lane-dense (kk, BC, L) layout --------
    x_flat = x.reshape(BC, Hp, Wp)
    pats = [x_flat[:, ki:ki + (n2 - 1) * s + 1:s,
                   kj:kj + (n3 - 1) * s + 1:s].reshape(BC, L)
            for ki in range(k) for kj in range(k)]
    x_unf = jnp.stack(pats, axis=0)                       # (kk, BC, L)

    # ---- tile selection with (8,128)-padding-aware VMEM accounting ---------
    itemsize = jnp.dtype(x.dtype).itemsize
    Lp = ((L + 127) // 128) * 128                         # lane-padded block row
    # Double-buffered blocks (2 inputs + 2 outputs) + ~2 block rows of
    # compute temporaries (running max + current tap).
    bytes_per_bc = (2 * (3 * kk + 1) + 2) * Lp * itemsize
    vmem_cap, is_v7 = _chip_info()
    budget = min(48 * 1024 * 1024, (2 * vmem_cap) // 3)   # ~42 MiB v7x, 48 MiB v5e/v6e
    max_tile = max(8, ((budget // bytes_per_bc) // 8) * 8)
    if is_v7 and BC >= 16:
        # Keep at least two grid steps so CORE_PARALLEL can split across TCs.
        max_tile = min(max_tile, max(8, ((BC // 2) // 8) * 8))

    if BC <= max_tile:
        tile_bc = BC                                       # one full block
    else:
        # Prefer a multiple-of-8 divisor of BC: full sublanes, and no ragged
        # partial block over the aliased, in-place-updated state output.
        divs = [d for d in range(8, max_tile + 1, 8) if BC % d == 0]
        tile_bc = max(divs) if divs else max_tile
    grid = (pl.cdiv(BC, tile_bc),)

    dim_sem = (pltpu.CORE_PARALLEL,) if is_v7 else ("parallel",)

    kernel = partial(_li_pool_kernel, kk=kk)
    out_flat, new_ss = pl.pallas_call(
        kernel,
        grid=grid,
        in_specs=[
            pl.BlockSpec((kk, tile_bc, L), lambda i: (0, i, 0)),
            pl.BlockSpec((kk, tile_bc, L), lambda i: (0, i, 0)),
        ],
        out_specs=(
            pl.BlockSpec((tile_bc, L), lambda i: (i, 0)),
            pl.BlockSpec((kk, tile_bc, L), lambda i: (0, i, 0)),
        ),
        out_shape=(
            jax.ShapeDtypeStruct((BC, L), x.dtype),
            jax.ShapeDtypeStruct((kk, BC, L), x.dtype),
        ),
        # sumspike input -> new-sumspike output: update the state in place.
        input_output_aliases={1: 1},
        compiler_params=pltpu.CompilerParams(
            dimension_semantics=dim_sem,
            vmem_limit_bytes=int(min(vmem_cap, budget + 16 * 1024 * 1024)),
        ),
        cost_estimate=pl.CostEstimate(
            flops=3 * kk * BC * L,
            transcendentals=0,
            bytes_accessed=(3 * kk + 1) * BC * L * itemsize,
        ),
    )(x_unf, sumspike)

    out = out_flat.reshape(B, C, n2, n3)
    return out, new_ss


def _li_pool_reference(x, sumspike_nat, *, kernel_size, stride, padding,
                       ceil_mode):
    """Pure-JAX reference in the module's natural (B,C,kk,n2,n3) layout."""
    k, s, p = kernel_size, stride, padding
    n2 = _pooled_size(x.shape[2], k, s, p, ceil_mode)
    n3 = _pooled_size(x.shape[3], k, s, p, ceil_mode)
    pad2 = _right_pad(x.shape[2], n2, k, s, p)
    pad3 = _right_pad(x.shape[3], n3, k, s, p)
    xp = jnp.pad(x, ((0, 0), (0, 0), (p, p + pad2), (p, p + pad3)))
    patches = jnp.stack(
        [xp[:, :, ki:ki + (n2 - 1) * s + 1:s, kj:kj + (n3 - 1) * s + 1:s]
         for ki in range(k) for kj in range(k)], axis=2)
    ss = sumspike_nat + patches
    out = ss.max(axis=2)
    ss = ss - out[:, :, None]
    return out, ss


if __name__ == "__main__":
    key = jax.random.PRNGKey(0)
    B, C, H, W = 2, 4, 16, 16
    k, s, p = 2, 2, 0
    kk = k * k
    nh = _pooled_size(H, k, s, p, False)
    nw = _pooled_size(W, k, s, p, False)

    k1, k2, k3, k4 = jax.random.split(key, 4)
    x1 = jax.random.normal(k1, (B, C, H, W), dtype=jnp.float32)
    x2 = jax.random.normal(k2, (B, C, H, W), dtype=jnp.float32)

    # ---- step 1 (zero state: behaves like max-pool) ----
    rout1, rss1 = _li_pool_reference(
        x1, jnp.zeros((B, C, kk, nh, nw), jnp.float32),
        kernel_size=k, stride=s, padding=p, ceil_mode=False)
    ss0 = init_sumspike((B, C, H, W), kernel_size=k, stride=s, padding=p,
                        ceil_mode=False, dtype=jnp.float32)
    out1, ss1 = li_pooling(x1, ss0, kernel_size=k, stride=s, padding=p,
                           ceil_mode=False)
    out1, ss1 = jax.block_until_ready((out1, ss1))
    assert out1.shape == (B, C, nh, nw)
    ss1_nat = sumspike_to_natural(ss1, B, C, nh, nw)
    assert bool(jnp.allclose(out1, rout1, atol=1e-6)), "step-1 output mismatch"
    assert bool(jnp.allclose(ss1_nat, rss1, atol=1e-6)), "step-1 state mismatch"
    assert bool(jnp.allclose(jnp.max(ss1_nat, axis=2), jnp.zeros_like(out1),
                             atol=1e-6))

    # ---- step 2 (state carry-over, lateral inhibition active) ----
    rout2, rss2 = _li_pool_reference(x2, rss1, kernel_size=k, stride=s,
                                     padding=p, ceil_mode=False)
    out2, ss2 = li_pooling(x2, ss1, kernel_size=k, stride=s, padding=p,
                           ceil_mode=False)
    out2, ss2 = jax.block_until_ready((out2, ss2))
    ss2_nat = sumspike_to_natural(ss2, B, C, nh, nw)
    assert bool(jnp.allclose(out2, rout2, atol=1e-6)), "step-2 output mismatch"
    assert bool(jnp.allclose(ss2_nat, rss2, atol=1e-6)), "step-2 state mismatch"

    # ---- non-square input: per-axis pooling ----
    Hn, Wn = 16, 8
    xns = jax.random.normal(k3, (B, C, Hn, Wn), dtype=jnp.float32)
    nh2 = _pooled_size(Hn, k, s, p, False)
    nw2 = _pooled_size(Wn, k, s, p, False)
    rout_ns, rss_ns = _li_pool_reference(
        xns, jnp.zeros((B, C, kk, nh2, nw2), jnp.float32),
        kernel_size=k, stride=s, padding=p, ceil_mode=False)
    ss_ns0 = init_sumspike((B, C, Hn, Wn), kernel_size=k, stride=s, padding=p,
                           ceil_mode=False, dtype=jnp.float32)
    out_ns, ss_ns = li_pooling(xns, ss_ns0, kernel_size=k, stride=s,
                               padding=p, ceil_mode=False)
    out_ns, ss_ns = jax.block_until_ready((out_ns, ss_ns))
    assert out_ns.shape == (B, C, nh2, nw2)
    ss_ns_nat = sumspike_to_natural(ss_ns, B, C, nh2, nw2)
    assert bool(jnp.allclose(out_ns, rout_ns, atol=1e-6)), "non-square output mismatch"
    assert bool(jnp.allclose(ss_ns_nat, rss_ns, atol=1e-6)), "non-square state mismatch"

    # ---- k=3, stride=2, padding=1 (overlapping windows, zero padding) ----
    k3_, s3_, p3_ = 3, 2, 1
    kk3 = k3_ * k3_
    nh3 = _pooled_size(H, k3_, s3_, p3_, False)
    nw3 = _pooled_size(W, k3_, s3_, p3_, False)
    x4 = jax.random.normal(k4, (B, C, H, W), dtype=jnp.float32)
    rout4, rss4 = _li_pool_reference(
        x4, jnp.zeros((B, C, kk3, nh3, nw3), jnp.float32),
        kernel_size=k3_, stride=s3_, padding=p3_, ceil_mode=False)
    ss4_0 = init_sumspike((B, C, H, W), kernel_size=k3_, stride=s3_,
                          padding=p3_, ceil_mode=False, dtype=jnp.float32)
    out4, ss4 = li_pooling(x4, ss4_0, kernel_size=k3_, stride=s3_,
                           padding=p3_, ceil_mode=False)
    out4, ss4 = jax.block_until_ready((out4, ss4))
    ss4_nat = sumspike_to_natural(ss4, B, C, nh3, nw3)
    assert bool(jnp.allclose(out4, rout4, atol=1e-6)), "k3 output mismatch"
    assert bool(jnp.allclose(ss4_nat, rss4, atol=1e-6)), "k3 state mismatch"

    print("KERNEL_OK")
</pallas_src>

<mosaic_0001>
module attributes {stable_mosaic.version = 11 : i64} {
  func.func @_li_pool_kernel(%arg0: i32, %arg1: memref<4x8x64xf32, #tpu.memory_space<vmem>>, %arg2: memref<4x8x64xf32, #tpu.memory_space<vmem>>, %arg3: memref<8x64xf32, #tpu.memory_space<vmem>>, %arg4: memref<4x8x64xf32, #tpu.memory_space<vmem>>) attributes {dimension_semantics = [#tpu.dimension_semantics<parallel>], iteration_bounds = array<i64: 1>, scalar_prefetch = 0 : i64, scratch_operands = 0 : i64, tpu.core_type = #tpu.core_type<tc>, window_params = [{transform_indices = @transform_0, window_bounds = array<i64: 4, 8, 64>}, {transform_indices = @transform_1, window_bounds = array<i64: 4, 8, 64>}, {transform_indices = @transform_2, window_bounds = array<i64: 8, 64>}, {transform_indices = @transform_3, window_bounds = array<i64: 4, 8, 64>}]} {
    %c0 = arith.constant 0 : index
    %c0_0 = arith.constant 0 : index
    %c0_1 = arith.constant 0 : index
    %0 = vector.load %arg2[%c0, %c0_0, %c0_1] : memref<4x8x64xf32, #tpu.memory_space<vmem>>, vector<1x8x64xf32>
    %1 = vector.shape_cast %0 : vector<1x8x64xf32> to vector<8x64xf32>
    %c0_2 = arith.constant 0 : index
    %c0_3 = arith.constant 0 : index
    %c0_4 = arith.constant 0 : index
    %2 = vector.load %arg1[%c0_2, %c0_3, %c0_4] : memref<4x8x64xf32, #tpu.memory_space<vmem>>, vector<1x8x64xf32>
    %3 = vector.shape_cast %2 : vector<1x8x64xf32> to vector<8x64xf32>
    %4 = arith.addf %1, %3 : vector<8x64xf32>
    %c0_5 = arith.constant 0 : index
    %c0_6 = arith.constant 0 : index
    %c0_7 = arith.constant 0 : index
    %5 = vector.load %arg4[%c0_5, %c0_6, %c0_7] : memref<4x8x64xf32, #tpu.memory_space<vmem>>, vector<1x8x64xf32>
    %6 = vector.shape_cast %5 : vector<1x8x64xf32> to vector<8x64xf32>
    %7 = vector.shape_cast %4 : vector<8x64xf32> to vector<1x8x64xf32>
    tpu.vector_store %arg4[%c0_5, %c0_6, %c0_7], %7 {strides = array<i32>} : memref<4x8x64xf32, #tpu.memory_space<vmem>>, vector<1x8x64xf32>,
    %c1 = arith.constant 1 : index
    %c0_8 = arith.constant 0 : index
    %c0_9 = arith.constant 0 : index
    %8 = vector.load %arg2[%c1, %c0_8, %c0_9] : memref<4x8x64xf32, #tpu.memory_space<vmem>>, vector<1x8x64xf32>
    %9 = vector.shape_cast %8 : vector<1x8x64xf32> to vector<8x64xf32>
    %c1_10 = arith.constant 1 : index
    %c0_11 = arith.constant 0 : index
    %c0_12 = arith.constant 0 : index
    %10 = vector.load %arg1[%c1_10, %c0_11, %c0_12] : memref<4x8x64xf32, #tpu.memory_space<vmem>>, vector<1x8x64xf32>
    %11 = vector.shape_cast %10 : vector<1x8x64xf32> to vector<8x64xf32>
    %12 = arith.addf %9, %11 : vector<8x64xf32>
    %c1_13 = arith.constant 1 : index
    %c0_14 = arith.constant 0 : index
    %c0_15 = arith.constant 0 : index
    %13 = vector.load %arg4[%c1_13, %c0_14, %c0_15] : memref<4x8x64xf32, #tpu.memory_space<vmem>>, vector<1x8x64xf32>
    %14 = vector.shape_cast %13 : vector<1x8x64xf32> to vector<8x64xf32>
    %15 = vector.shape_cast %12 : vector<8x64xf32> to vector<1x8x64xf32>
    tpu.vector_store %arg4[%c1_13, %c0_14, %c0_15], %15 {strides = array<i32>} : memref<4x8x64xf32, #tpu.memory_space<vmem>>, vector<1x8x64xf32>,
    %16 = arith.maximumf %4, %12 : vector<8x64xf32>
    %c2 = arith.constant 2 : index
    %c0_16 = arith.constant 0 : index
    %c0_17 = arith.constant 0 : index
    %17 = vector.load %arg2[%c2, %c0_16, %c0_17] : memref<4x8x64xf32, #tpu.memory_space<vmem>>, vector<1x8x64xf32>
    %18 = vector.shape_cast %17 : vector<1x8x64xf32> to vector<8x64xf32>
    %c2_18 = arith.constant 2 : index
    %c0_19 = arith.constant 0 : index
    %c0_20 = arith.constant 0 : index
    %19 = vector.load %arg1[%c2_18, %c0_19, %c0_20] : memref<4x8x64xf32, #tpu.memory_space<vmem>>, vector<1x8x64xf32>
    %20 = vector.shape_cast %19 : vector<1x8x64xf32> to vector<8x64xf32>
    %21 = arith.addf %18, %20 : vector<8x64xf32>
    %c2_21 = arith.constant 2 : index
    %c0_22 = arith.constant 0 : index
    %c0_23 = arith.constant 0 : index
    %22 = vector.load %arg4[%c2_21, %c0_22, %c0_23] : memref<4x8x64xf32, #tpu.memory_space<vmem>>, vector<1x8x64xf32>
    %23 = vector.shape_cast %22 : vector<1x8x64xf32> to vector<8x64xf32>
    %24 = vector.shape_cast %21 : vector<8x64xf32> to vector<1x8x64xf32>
    tpu.vector_store %arg4[%c2_21, %c0_22, %c0_23], %24 {strides = array<i32>} : memref<4x8x64xf32, #tpu.memory_space<vmem>>, vector<1x8x64xf32>,
    %25 = arith.maximumf %16, %21 : vector<8x64xf32>
    %c3 = arith.constant 3 : index
    %c0_24 = arith.constant 0 : index
    %c0_25 = arith.constant 0 : index
    %26 = vector.load %arg2[%c3, %c0_24, %c0_25] : memref<4x8x64xf32, #tpu.memory_space<vmem>>, vector<1x8x64xf32>
    %27 = vector.shape_cast %26 : vector<1x8x64xf32> to vector<8x64xf32>
    %c3_26 = arith.constant 3 : index
    %c0_27 = arith.constant 0 : index
    %c0_28 = arith.constant 0 : index
    %28 = vector.load %arg1[%c3_26, %c0_27, %c0_28] : memref<4x8x64xf32, #tpu.memory_space<vmem>>, vector<1x8x64xf32>
    %29 = vector.shape_cast %28 : vector<1x8x64xf32> to vector<8x64xf32>
    %30 = arith.addf %27, %29 : vector<8x64xf32>
    %c3_29 = arith.constant 3 : index
    %c0_30 = arith.constant 0 : index
    %c0_31 = arith.constant 0 : index
    %31 = vector.load %arg4[%c3_29, %c0_30, %c0_31] : memref<4x8x64xf32, #tpu.memory_space<vmem>>, vector<1x8x64xf32>
    %32 = vector.shape_cast %31 : vector<1x8x64xf32> to vector<8x64xf32>
    %33 = vector.shape_cast %30 : vector<8x64xf32> to vector<1x8x64xf32>
    tpu.vector_store %arg4[%c3_29, %c0_30, %c0_31], %33 {strides = array<i32>} : memref<4x8x64xf32, #tpu.memory_space<vmem>>, vector<1x8x64xf32>,
    %34 = arith.maximumf %25, %30 : vector<8x64xf32>
    %c0_32 = arith.constant 0 : index
    %c0_33 = arith.constant 0 : index
    %35 = vector.load %arg3[%c0_32, %c0_33] : memref<8x64xf32, #tpu.memory_space<vmem>>, vector<8x64xf32>
    tpu.vector_store %arg3[%c0_32, %c0_33], %34 {strides = array<i32>} : memref<8x64xf32, #tpu.memory_space<vmem>>, vector<8x64xf32>,
    %c0_34 = arith.constant 0 : index
    %c0_35 = arith.constant 0 : index
    %c0_36 = arith.constant 0 : index
    %36 = vector.load %arg4[%c0_34, %c0_35, %c0_36] : memref<4x8x64xf32, #tpu.memory_space<vmem>>, vector<1x8x64xf32>
    %37 = vector.shape_cast %36 : vector<1x8x64xf32> to vector<8x64xf32>
    %38 = arith.subf %37, %34 : vector<8x64xf32>
    %c0_37 = arith.constant 0 : index
    %c0_38 = arith.constant 0 : index
    %c0_39 = arith.constant 0 : index
    %39 = vector.load %arg4[%c0_37, %c0_38, %c0_39] : memref<4x8x64xf32, #tpu.memory_space<vmem>>, vector<1x8x64xf32>
    %40 = vector.shape_cast %39 : vector<1x8x64xf32> to vector<8x64xf32>
    %41 = vector.shape_cast %38 : vector<8x64xf32> to vector<1x8x64xf32>
    tpu.vector_store %arg4[%c0_37, %c0_38, %c0_39], %41 {strides = array<i32>} : memref<4x8x64xf32, #tpu.memory_space<vmem>>, vector<1x8x64xf32>,
    %c1_40 = arith.constant 1 : index
    %c0_41 = arith.constant 0 : index
    %c0_42 = arith.constant 0 : index
    %42 = vector.load %arg4[%c1_40, %c0_41, %c0_42] : memref<4x8x64xf32, #tpu.memory_space<vmem>>, vector<1x8x64xf32>
    %43 = vector.shape_cast %42 : vector<1x8x64xf32> to vector<8x64xf32>
    %44 = arith.subf %43, %34 : vector<8x64xf32>
    %c1_43 = arith.constant 1 : index
    %c0_44 = arith.constant 0 : index
    %c0_45 = arith.constant 0 : index
    %45 = vector.load %arg4[%c1_43, %c0_44, %c0_45] : memref<4x8x64xf32, #tpu.memory_space<vmem>>, vector<1x8x64xf32>
    %46 = vector.shape_cast %45 : vector<1x8x64xf32> to vector<8x64xf32>
    %47 = vector.shape_cast %44 : vector<8x64xf32> to vector<1x8x64xf32>
    tpu.vector_store %arg4[%c1_43, %c0_44, %c0_45], %47 {strides = array<i32>} : memref<4x8x64xf32, #tpu.memory_space<vmem>>, vector<1x8x64xf32>,
    %c2_46 = arith.constant 2 : index
    %c0_47 = arith.constant 0 : index
    %c0_48 = arith.constant 0 : index
    %48 = vector.load %arg4[%c2_46, %c0_47, %c0_48] : memref<4x8x64xf32, #tpu.memory_space<vmem>>, vector<1x8x64xf32>
    %49 = vector.shape_cast %48 : vector<1x8x64xf32> to vector<8x64xf32>
    %50 = arith.subf %49, %34 : vector<8x64xf32>
    %c2_49 = arith.constant 2 : index
    %c0_50 = arith.constant 0 : index
    %c0_51 = arith.constant 0 : index
    %51 = vector.load %arg4[%c2_49, %c0_50, %c0_51] : memref<4x8x64xf32, #tpu.memory_space<vmem>>, vector<1x8x64xf32>
    %52 = vector.shape_cast %51 : vector<1x8x64xf32> to vector<8x64xf32>
    %53 = vector.shape_cast %50 : vector<8x64xf32> to vector<1x8x64xf32>
    tpu.vector_store %arg4[%c2_49, %c0_50, %c0_51], %53 {strides = array<i32>} : memref<4x8x64xf32, #tpu.memory_space<vmem>>, vector<1x8x64xf32>,
    %c3_52 = arith.constant 3 : index
    %c0_53 = arith.constant 0 : index
    %c0_54 = arith.constant 0 : index
    %54 = vector.load %arg4[%c3_52, %c0_53, %c0_54] : memref<4x8x64xf32, #tpu.memory_space<vmem>>, vector<1x8x64xf32>
    %55 = vector.shape_cast %54 : vector<1x8x64xf32> to vector<8x64xf32>
    %56 = arith.subf %55, %34 : vector<8x64xf32>
    %c3_55 = arith.constant 3 : index
    %c0_56 = arith.constant 0 : index
    %c0_57 = arith.constant 0 : index
    %57 = vector.load %arg4[%c3_55, %c0_56, %c0_57] : memref<4x8x64xf32, #tpu.memory_space<vmem>>, vector<1x8x64xf32>
    %58 = vector.shape_cast %57 : vector<1x8x64xf32> to vector<8x64xf32>
    %59 = vector.shape_cast %56 : vector<8x64xf32> to vector<1x8x64xf32>
    tpu.vector_store %arg4[%c3_55, %c0_56, %c0_57], %59 {strides = array<i32>} : memref<4x8x64xf32, #tpu.memory_space<vmem>>, vector<1x8x64xf32>,
    return
  }
  func.func @transform_0(%arg0: i32) -> (i32, i32, i32) {
    %c0_i32 = arith.constant 0 : i32
    %c0_i32_0 = arith.constant 0 : i32
    %c0_i32_1 = arith.constant 0 : i32
    return %c0_i32, %arg0, %c0_i32_0 : i32, i32, i32
  }
  func.func @transform_1(%arg0: i32) -> (i32, i32, i32) {
    %c0_i32 = arith.constant 0 : i32
    %c0_i32_0 = arith.constant 0 : i32
    %c0_i32_1 = arith.constant 0 : i32
    return %c0_i32, %arg0, %c0_i32_0 : i32, i32, i32
  }
  func.func @transform_2(%arg0: i32) -> (i32, i32) {
    %c0_i32 = arith.constant 0 : i32
    %c0_i32_0 = arith.constant 0 : i32
    return %arg0, %c0_i32 : i32, i32
  }
  func.func @transform_3(%arg0: i32) -> (i32, i32, i32) {
    %c0_i32 = arith.constant 0 : i32
    %c0_i32_0 = arith.constant 0 : i32
    %c0_i32_1 = arith.constant 0 : i32
    return %c0_i32, %arg0, %c0_i32_0 : i32, i32, i32
  }
}

</mosaic_0001>

<bundles_post_ra>
// kernel: li_pooling.1
= control target key start
LH: loop header
LB: loop body
LE: loop exit
PB: predicated region body
PF: predicated region fallthrough
CT: control target
= control target key end

     0   :  { %9 = vsyncpa [#allocation3], 0  ;;  %s311_s0 = inlined_call_operand.hbm [shape: f32[4,8,64], index: 0, kind: input, shape index: {}]   ;;  %s312_s1 = inlined_call_operand.hbm [shape: f32[4,8,64], index: 1, kind: input, shape index: {}, may-alias: {1,3}]   ;;  %s313_s2 = inlined_call_operand.hbm [shape: f32[8,64], index: 2, kind: output, shape index: {0}]   ;;  %s314_s3 = inlined_call_operand.hbm [shape: f32[4,8,64], index: 3, kind: output, shape index: {1}, may-alias: {1,3}]  }
   0x1   :  { %10 = vsyncpa [#allocation6], 0 }
   0x2   :  { %11 = vsyncpa [#allocation4], 0 }
   0x3   :  { %12 = vsyncpa [#allocation9], 0  ;;  %s219_s12 = smov [#allocation2]   ;;  %s123_s16 = scalar_lea.hbm %s311_s0, 512 }
   0x4   :  { %s18_s13 = sshll.u32 %s219_s12, 4  ;;  %p124_p0 = scmp.ne.s32.totalorder %s311_s0, %s123_s16  ;;  %s19_s13 = int_to_ptr.vmem [resolvable:$true] %s18_s13 }
   0x5   :  { %p127_p1 = scmp.lt.u32.totalorder %s123_s16, %s311_s0 }
   0x7   :  { %p129_p2 = pnand %p127_p1, %p124_p0 }
   0x9   :  { %132 = shalt.err (!%p129_p2)
}
   0xa   :  { %s133_s21 = scalar_lea.vmem %s19_s13, 512  ;;  %p138_p4 = scmp.lt.s32.totalorder %s19_s13, %s19_s13 }
   0xb   :  { %p134_p3 = scmp.ne.s32.totalorder %s19_s13, %s133_s21  ;;  %p139_p5 = scmp.lt.s32.totalorder %s133_s21, %s133_s21 }
   0xd   :  { %p140_p6 = por %p139_p5, %p138_p4 }
   0xf   :  { %p141_p7 = pnand %p140_p6, %p134_p3 }
  0x11   :  { %144 = shalt.err (!%p141_p7)
}
  0x12   :  { %s220_s22 = smov 128   ;;  %s221_s23 = smov 8  }
  0x13   :  { %24 = dma.hbm_to_vmem [thread:$0]  %s311_s0, 512, %s19_s13, [#allocation3], %s220_s22, %s220_s22, %s221_s23  }
  0x14   :  { %s222_s26 = smov [#allocation5]   ;;  %s145_s30 = scalar_lea.hbm %s312_s1, 512 }
  0x15   :  { %s30_s27 = sshll.u32 %s222_s26, 4  ;;  %p146_p8 = scmp.ne.s32.totalorder %s312_s1, %s145_s30  ;;  %s31_s27 = int_to_ptr.vmem [resolvable:$true] %s30_s27 }
  0x16   :  { %p149_p9 = scmp.lt.u32.totalorder %s145_s30, %s312_s1 }
  0x18   :  { %p151_p10 = pnand %p149_p9, %p146_p8 }
  0x1a   :  { %154 = shalt.err (!%p151_p10)
}
  0x1b   :  { %s155_s8 = scalar_lea.vmem %s31_s27, 512  ;;  %p160_p12 = scmp.lt.s32.totalorder %s31_s27, %s31_s27 }
  0x1c   :  { %p156_p11 = scmp.ne.s32.totalorder %s31_s27, %s155_s8  ;;  %p161_p13 = scmp.lt.s32.totalorder %s155_s8, %s155_s8 }
  0x1e   :  { %p162_p0 = por %p161_p13, %p160_p12 }
  0x20   :  { %p163_p1 = pnand %p162_p0, %p156_p11 }
  0x22   :  { %166 = shalt.err (!%p163_p1)
}
  0x23   :  { %36 = dma.hbm_to_vmem [thread:$0]  %s312_s1, 512, %s31_s27, [#allocation6], %s220_s22, %s220_s22, %s221_s23  }
  0x24   :  { %211 = dma.done.wait [#allocation3], 512  }
  0x25   :  { %212 = vsyncadd [#allocation3], 4294966784 }
  0x26   :  { %213 = dma.done.wait [#allocation6], 512  }
  0x27   :  { %214 = vsyncadd [#allocation6], 4294966784  ;;  %v43_v0 = vld [vmem:[#allocation5] sm:$0xff]  ;;  %vm46_vm0 = vcmask 523264   ;;  %v49_v2 = vld [vmem:[#allocation5 + $0x8] sm:$0xff]  ;;  %s223_s1 = smov [#allocation7]  }
  0x28   :  { %v44_v1 = vld [vmem:[#allocation2] sm:$0xff]  ;;  %v51_v4 = vld [vmem:[#allocation2 + $0x8] sm:$0xff]  ;;  %v57_v5 = vld [vmem:[#allocation5 + $0x10] sm:$0xff]  ;;  %s91_s10 = sshll.u32 %s223_s1, 4  ;;  %s224_s11 = smov [#allocation8]   ;;  %s92_s10 = int_to_ptr.vmem [resolvable:$true] %s91_s10 }
  0x29   :  { %v45_v3 = vadd.f32 %v44_v1, %v43_v0  ;;  %v59_v6 = vld [vmem:[#allocation2 + $0x10] sm:$0xff]  ;;  %v52_v7 = vadd.f32 %v51_v4, %v49_v2  ;;  %v65_v9 = vld [vmem:[#allocation5 + $0x18] sm:$0xff]  ;;  %s100_s12 = sshll.u32 %s224_s11, 4  ;;  %s167_s13 = scalar_lea.vmem %s92_s10, 128  ;;  %s101_s12 = int_to_ptr.vmem [resolvable:$true] %s100_s12 }
  0x2a   :  { %v60_v8 = vadd.f32 %v59_v6, %v57_v5  ;;  %v67_v10 = vld [vmem:[#allocation2 + $0x18] sm:$0xff]  ;;  %p168_p2 = scmp.ne.s32.totalorder %s92_s10, %s167_s13  ;;  %p172_p3 = scmp.lt.s32.totalorder %s92_s10, %s92_s10 }
  0x2b   :  { %47 = vst.msk [vmem:[#allocation8] sm:$0xff] %vm46_vm0, %v45_v3  ;;  %v68_v11 = vadd.f32 %v67_v10, %v65_v9  ;;  %54 = vst.msk [vmem:[#allocation8 + $0x8] sm:$0xff] %vm46_vm0, %v52_v7  ;;  %v55_v12 = vmax.f32 %v45_v3, %v52_v7  ;;  %p173_p4 = scmp.lt.s32.totalorder %s167_s13, %s167_s13 }
  0x2c   :  { %62 = vst.msk [vmem:[#allocation8 + $0x10] sm:$0xff] %vm46_vm0, %v60_v8 }
  0x2d   :  { %70 = vst.msk [vmem:[#allocation8 + $0x18] sm:$0xff] %vm46_vm0, %v68_v11  ;;  %v63_v13 = vmax.f32 %v55_v12, %v60_v8  ;;  %p174_p5 = por %p173_p4, %p172_p3 }
  0x2f   :  { %v71_v14 = vmax.f32 %v63_v13, %v68_v11  ;;  %p175_p6 = pnand %p174_p5, %p168_p2 }
  0x31   :  { %72 = vst.msk [vmem:[#allocation7] sm:$0xff] %vm46_vm0, %v71_v14 }
  0x32   :  { %v73_v15 = vld [vmem:[#allocation8] sm:$0xff]  ;;  %v76_v17 = vld [vmem:[#allocation8 + $0x8] sm:$0xff] }
  0x33   :  { %v74_v16 = vsub.f32 %v73_v15, %v71_v14  ;;  %v79_v18 = vld [vmem:[#allocation8 + $0x10] sm:$0xff] }
  0x34   :  { %178 = shalt.err (!%p175_p6)
}
  0x35   :  { %s179_s16 = scalar_lea.hbm %s313_s2, 128 }
  0x36   :  { %p180_p7 = scmp.ne.s32.totalorder %s313_s2, %s179_s16  ;;  %p183_p8 = scmp.lt.u32.totalorder %s179_s16, %s313_s2 }
  0x38   :  { %p185_p9 = pnand %p183_p8, %p180_p7 }
  0x3a   :  { %188 = shalt.err (!%p185_p9)
}
  0x3b   :  { %94 = dma.vmem_to_hbm [thread:$0]  %s92_s10, 128, %s313_s2, [#allocation4]   ;;  %v77_v19 = vsub.f32 %v76_v17, %v71_v14  ;;  %v80_v20 = vsub.f32 %v79_v18, %v71_v14  ;;  %v82_v21 = vld [vmem:[#allocation8 + $0x18] sm:$0xff]  ;;  %75 = vst.msk [vmem:[#allocation8] sm:$0xff] %vm46_vm0, %v74_v16 }
  0x3c   :  { %v83_v22 = vsub.f32 %v82_v21, %v71_v14  ;;  %s189_s25 = scalar_lea.vmem %s101_s12, 512  ;;  %p194_p11 = scmp.lt.s32.totalorder %s101_s12, %s101_s12 }
  0x3d   :  { %78 = vst.msk [vmem:[#allocation8 + $0x8] sm:$0xff] %vm46_vm0, %v77_v19  ;;  %81 = vst.msk [vmem:[#allocation8 + $0x10] sm:$0xff] %vm46_vm0, %v80_v20  ;;  %p190_p10 = scmp.ne.s32.totalorder %s101_s12, %s189_s25  ;;  %p195_p12 = scmp.lt.s32.totalorder %s189_s25, %s189_s25 }
  0x3e   :  { %84 = vst.msk [vmem:[#allocation8 + $0x18] sm:$0xff] %vm46_vm0, %v83_v22 }
  0x3f   :  { %p196_p13 = por %p195_p12, %p194_p11 }
  0x41   :  { %p197_p0 = pnand %p196_p13, %p190_p10 }
  0x43   :  { %200 = shalt.err (!%p197_p0)
}
  0x44   :  { %s201_s27 = scalar_lea.hbm %s314_s3, 512 }
  0x45   :  { %p202_p1 = scmp.ne.s32.totalorder %s314_s3, %s201_s27  ;;  %p205_p2 = scmp.lt.u32.totalorder %s201_s27, %s314_s3 }
  0x47   :  { %p207_p3 = pnand %p205_p2, %p202_p1 }
  0x49   :  { %210 = shalt.err (!%p207_p3)
}
  0x4a   :  { %106 = dma.vmem_to_hbm [thread:$0]  %s101_s12, 512, %s314_s3, [#allocation9], %s220_s22, %s220_s22, %s221_s23  }
  0x4b   :  { %215 = dma.done.wait [#allocation4], 128  }
  0x4c   :  { %216 = vsyncadd [#allocation4], 4294967168 }
  0x4d   :  { %217 = dma.done.wait [#allocation9], 512  }
  0x4e   :  { %218 = vsyncadd [#allocation9], 4294966784 }
  0x4f   :  { %113 = vsyncpa [#allocation3], 1 }
  0x50   :  { %114 = vsyncpa [#allocation6], 1 }
  0x51   :  { %115 = vsyncpa [#allocation4], 1 }
  0x52   :  { %116 = vsyncpa [#allocation9], 1 }

</bundles_post_ra>
